<compile_context>
chip_gen: v7x
topology: tpu7x:2x2x1
jax: 0.10.0
libtpu: 0.0.40
codegen_flags: <defaults>
</compile_context>

<pallas_src>
import functools

import numpy as np
import jax
import jax.numpy as jnp
from jax import lax
from jax.experimental import pallas as pl
from jax.experimental.pallas import tpu as pltpu

# MXU operand dtype: bf16 is native on v5e/v6e/v7x and halves operand bytes.
# BN / statistics / elementwise math stays in f32.
MATMUL_DTYPE = jnp.bfloat16
EPS = 1e-5
_VMEM_LIMIT = 48 * 1024 * 1024   # above the 16/32 MiB defaults, below every chip's physical VMEM


def _spatial_tile(s, candidates=(1024, 512, 256, 128)):
    """Pick a lane tile that divides the flattened-spatial extent (no padding needed)."""
    for t in candidates:
        if s >= t and s % t == 0:
            return t
    return s   # small inputs: single full-extent block


# ----------------------------- Pallas kernel bodies -----------------------------

def _conv1_proj_kernel(x_ref, w1_ref, wp_ref, y_ref, r_ref, ps_ref, pss_ref):
    """1x1x1 conv1 + 1x1x1 residual projection (sharing the x read) + BN1 partial stats."""
    x = x_ref[0].astype(MATMUL_DTYPE)                                   # (Cin, Ts)
    y = jnp.dot(w1_ref[...], x, preferred_element_type=jnp.float32)     # (Cb, Ts)
    y_ref[0] = y
    r_ref[0] = jnp.dot(wp_ref[...], x, preferred_element_type=jnp.float32)
    ps_ref[0, 0] = jnp.sum(y, axis=1, keepdims=True)                    # per-tile partials
    pss_ref[0, 0] = jnp.sum(y * y, axis=1, keepdims=True)


def _conv1_only_kernel(x_ref, w1_ref, y_ref, ps_ref, pss_ref):
    x = x_ref[0].astype(MATMUL_DTYPE)
    y = jnp.dot(w1_ref[...], x, preferred_element_type=jnp.float32)
    y_ref[0] = y
    ps_ref[0, 0] = jnp.sum(y, axis=1, keepdims=True)
    pss_ref[0, 0] = jnp.sum(y * y, axis=1, keepdims=True)


def _bn_convt_kernel(y1_ref, sc_ref, sh_ref, wpar_ref, y2_ref, ps_ref, pss_ref,
                     *, dims, tap_offsets):
    """BN1+ReLU prologue + ConvTranspose3d(k=4, s=2, p=1) for one sample + BN2 partial stats.

    The 8 sub-pixel parities are computed as per-parity matmuls of a (Cb, 8*Cb) weight with an
    8-tap stack built in VMEM via static lane shifts + boundary masks (no HBM im2col, no
    structural-zero weight columns).  Output is written parity-major.
    # TODO(synk): for very large volumes (S * Cb f32 approaching VMEM) tile over D with a
    # one-slice halo instead of one whole sample per grid step.
    """
    D, H, W = dims
    S = D * H * W
    Cb = y1_ref.shape[1]

    # fused BN1 + ReLU prologue (f32), then one cast to the MXU operand dtype
    h = jnp.maximum(y1_ref[0] * sc_ref[...] + sh_ref[...], 0.0)
    h = h.astype(MATMUL_DTYPE)                                          # (Cb, S)

    # decode (d, h, w) of every lane for the boundary masks
    col = lax.broadcasted_iota(jnp.int32, (1, S), 1)
    wi = col % W
    hi = (col // W) % H
    di = col // (H * W)

    def shifted_tap(off):
        oz, oy, ox = off
        s = oz * H * W + oy * W + ox
        if s == 0:
            t = h
        elif s > 0:
            t = jnp.concatenate([h[:, s:], jnp.zeros((Cb, s), h.dtype)], axis=1)
        else:
            t = jnp.concatenate([jnp.zeros((Cb, -s), h.dtype), h[:, :S + s]], axis=1)
        conds = []
        if ox == 1:
            conds.append(wi < W - 1)
        if ox == -1:
            conds.append(wi >= 1)
        if oy == 1:
            conds.append(hi < H - 1)
        if oy == -1:
            conds.append(hi >= 1)
        if oz == 1:
            conds.append(di < D - 1)
        if oz == -1:
            conds.append(di >= 1)
        if conds:
            valid = conds[0]
            for c in conds[1:]:
                valid = valid & c
            t = jnp.where(valid, t, jnp.zeros_like(t))
        return t

    cache = {}
    acc_s = jnp.zeros((Cb, 1), jnp.float32)
    acc_ss = jnp.zeros((Cb, 1), jnp.float32)
    for e in range(8):                                   # 8 sub-pixel parities (ez, ey, ex)
        taps = tap_offsets[e]
        for off in taps:
            if off not in cache:
                cache[off] = shifted_tap(off)
        stack = jnp.concatenate([cache[off] for off in taps], axis=0)   # (8*Cb, S)
        z = jnp.dot(wpar_ref[e], stack, preferred_element_type=jnp.float32)  # (Cb, S) f32
        y2_ref[0, e] = z
        acc_s = acc_s + jnp.sum(z, axis=1, keepdims=True)
        acc_ss = acc_ss + jnp.sum(z * z, axis=1, keepdims=True)
    ps_ref[0] = acc_s
    pss_ref[0] = acc_ss


def _bn_conv3_kernel(y2_ref, sc_ref, sh_ref, w3_ref, y3_ref, ps_ref, pss_ref):
    """BN2+ReLU prologue + 1x1x1 conv3 + BN3 partial stats."""
    hact = jnp.maximum(y2_ref[0] * sc_ref[...] + sh_ref[...], 0.0)      # (Cb, Ts)
    y = jnp.dot(w3_ref[...], hact.astype(MATMUL_DTYPE),
                preferred_element_type=jnp.float32)                      # (Cout, Ts)
    y3_ref[0] = y
    ps_ref[0, 0] = jnp.sum(y, axis=1, keepdims=True)
    pss_ref[0, 0] = jnp.sum(y * y, axis=1, keepdims=True)


def _bn3_residual_kernel(y3_ref, r_ref, sc_ref, sh_ref, o_ref, *, relu):
    """BN3 (+ ReLU) + residual add.  The x2 nearest upsample is an in-kernel broadcast:
    the residual BlockSpec ignores the parity grid axis, so the same input-resolution
    residual block is reused for all 8 parities (never materialised at 8x size)."""
    out = y3_ref[0, 0] * sc_ref[...] + sh_ref[...]
    if relu:
        out = jnp.maximum(out, 0.0)
    o_ref[0, 0] = out + r_ref[0]


# ----------------------------- pallas_call wrappers -----------------------------

def _conv1_proj(x3, w1, wp, ts):
    N, Cin, S = x3.shape
    Cb, Cout = w1.shape[0], wp.shape[0]
    gs = S // ts
    return pl.pallas_call(
        _conv1_proj_kernel,
        out_shape=(jax.ShapeDtypeStruct((N, Cb, S), jnp.float32),
                   jax.ShapeDtypeStruct((N, Cout, S), jnp.float32),
                   jax.ShapeDtypeStruct((N, gs, Cb, 1), jnp.float32),
                   jax.ShapeDtypeStruct((N, gs, Cb, 1), jnp.float32)),
        grid=(N, gs),
        in_specs=[pl.BlockSpec((1, Cin, ts), lambda n, s: (n, 0, s)),
                  pl.BlockSpec((Cb, Cin), lambda n, s: (0, 0)),
                  pl.BlockSpec((Cout, Cin), lambda n, s: (0, 0))],
        out_specs=(pl.BlockSpec((1, Cb, ts), lambda n, s: (n, 0, s)),
                   pl.BlockSpec((1, Cout, ts), lambda n, s: (n, 0, s)),
                   pl.BlockSpec((1, 1, Cb, 1), lambda n, s: (n, s, 0, 0)),
                   pl.BlockSpec((1, 1, Cb, 1), lambda n, s: (n, s, 0, 0))),
        compiler_params=pltpu.CompilerParams(
            dimension_semantics=("parallel", "parallel"),
            vmem_limit_bytes=_VMEM_LIMIT),
    )(x3, w1, wp)


def _conv1_only(x3, w1, ts):
    N, Cin, S = x3.shape
    Cb = w1.shape[0]
    gs = S // ts
    return pl.pallas_call(
        _conv1_only_kernel,
        out_shape=(jax.ShapeDtypeStruct((N, Cb, S), jnp.float32),
                   jax.ShapeDtypeStruct((N, gs, Cb, 1), jnp.float32),
                   jax.ShapeDtypeStruct((N, gs, Cb, 1), jnp.float32)),
        grid=(N, gs),
        in_specs=[pl.BlockSpec((1, Cin, ts), lambda n, s: (n, 0, s)),
                  pl.BlockSpec((Cb, Cin), lambda n, s: (0, 0))],
        out_specs=(pl.BlockSpec((1, Cb, ts), lambda n, s: (n, 0, s)),
                   pl.BlockSpec((1, 1, Cb, 1), lambda n, s: (n, s, 0, 0)),
                   pl.BlockSpec((1, 1, Cb, 1), lambda n, s: (n, s, 0, 0))),
        compiler_params=pltpu.CompilerParams(
            dimension_semantics=("parallel", "parallel"),
            vmem_limit_bytes=_VMEM_LIMIT),
    )(x3, w1)


def _bn_convt(y1, sc1, sh1, wpar, tap_offsets, dims):
    N, Cb, S = y1.shape
    kern = functools.partial(_bn_convt_kernel, dims=dims, tap_offsets=tap_offsets)
    return pl.pallas_call(
        kern,
        out_shape=(jax.ShapeDtypeStruct((N, 8, Cb, S), jnp.float32),
                   jax.ShapeDtypeStruct((N, Cb, 1), jnp.float32),
                   jax.ShapeDtypeStruct((N, Cb, 1), jnp.float32)),
        grid=(N,),
        in_specs=[pl.BlockSpec((1, Cb, S), lambda n: (n, 0, 0)),
                  pl.BlockSpec((Cb, 1), lambda n: (0, 0)),
                  pl.BlockSpec((Cb, 1), lambda n: (0, 0)),
                  pl.BlockSpec((8, Cb, 8 * Cb), lambda n: (0, 0, 0))],
        out_specs=(pl.BlockSpec((1, 8, Cb, S), lambda n: (n, 0, 0, 0)),
                   pl.BlockSpec((1, Cb, 1), lambda n: (n, 0, 0)),
                   pl.BlockSpec((1, Cb, 1), lambda n: (n, 0, 0))),
        compiler_params=pltpu.CompilerParams(
            dimension_semantics=("parallel",),
            vmem_limit_bytes=_VMEM_LIMIT),
    )(y1, sc1, sh1, wpar)


def _bn_conv3(y2v, sc2, sh2, w3, ts):
    NP, Cb, S = y2v.shape
    Cout = w3.shape[0]
    gs = S // ts
    return pl.pallas_call(
        _bn_conv3_kernel,
        out_shape=(jax.ShapeDtypeStruct((NP, Cout, S), jnp.float32),
                   jax.ShapeDtypeStruct((NP, gs, Cout, 1), jnp.float32),
                   jax.ShapeDtypeStruct((NP, gs, Cout, 1), jnp.float32)),
        grid=(NP, gs),
        in_specs=[pl.BlockSpec((1, Cb, ts), lambda p, s: (p, 0, s)),
                  pl.BlockSpec((Cb, 1), lambda p, s: (0, 0)),
                  pl.BlockSpec((Cb, 1), lambda p, s: (0, 0)),
                  pl.BlockSpec((Cout, Cb), lambda p, s: (0, 0))],
        out_specs=(pl.BlockSpec((1, Cout, ts), lambda p, s: (p, 0, s)),
                   pl.BlockSpec((1, 1, Cout, 1), lambda p, s: (p, s, 0, 0)),
                   pl.BlockSpec((1, 1, Cout, 1), lambda p, s: (p, s, 0, 0))),
        compiler_params=pltpu.CompilerParams(
            dimension_semantics=("parallel", "parallel"),
            vmem_limit_bytes=_VMEM_LIMIT),
    )(y2v, sc2, sh2, w3)


def _bn3_residual(y3v, r, sc3, sh3, ts, relu):
    N, P, Cout, S = y3v.shape
    gs = S // ts
    kern = functools.partial(_bn3_residual_kernel, relu=relu)
    return pl.pallas_call(
        kern,
        out_shape=jax.ShapeDtypeStruct((N, P, Cout, S), jnp.float32),
        grid=(N, gs, P),     # parity innermost -> the residual block is only fetched once per (n, s)
        in_specs=[pl.BlockSpec((1, 1, Cout, ts), lambda n, s, e: (n, e, 0, s)),
                  pl.BlockSpec((1, Cout, ts), lambda n, s, e: (n, 0, s)),    # parity broadcast
                  pl.BlockSpec((Cout, 1), lambda n, s, e: (0, 0)),
                  pl.BlockSpec((Cout, 1), lambda n, s, e: (0, 0))],
        out_specs=pl.BlockSpec((1, 1, Cout, ts), lambda n, s, e: (n, e, 0, s)),
        compiler_params=pltpu.CompilerParams(
            dimension_semantics=("parallel", "parallel", "parallel"),
            vmem_limit_bytes=_VMEM_LIMIT),
    )(y3v, r, sc3, sh3)


# ----------------------------- host-side glue (tiny) -----------------------------

def _bn_scale_shift(ps, pss, count, gamma, beta, eps=EPS):
    """Reduce per-grid-step partial sums (tiny) and fold BN into a per-channel scale/shift."""
    red = tuple(range(ps.ndim - 2))
    s = jnp.sum(ps, axis=red)[:, 0]
    ss = jnp.sum(pss, axis=red)[:, 0]
    m = s / count
    # NOTE: E[y^2] - E[y]^2 in f32 with clamp; sums are f32-accumulated from f32 matmul
    # outputs.  TODO(synk): switch to Welford / two-pass variance for very large batches.
    v = jnp.maximum(ss / count - m * m, 0.0)
    scale = gamma * lax.rsqrt(v + eps)
    shift = beta - m * scale
    return (scale.reshape(-1, 1).astype(jnp.float32),
            shift.reshape(-1, 1).astype(jnp.float32))


def _convt_parity_weights(w2):
    """ConvTranspose3d weight (Cin, Cout, 4, 4, 4), stride 2, padding 1 ->
    per-parity matrices (8, Cout, 8*Cin) and the 8 tap offsets of each parity.

    1-D sub-pixel decomposition:  out[2m] = in[m]*w[1] + in[m-1]*w[3]
                                  out[2m+1] = in[m]*w[2] + in[m+1]*w[0]
    """
    w2 = np.asarray(w2, np.float32)
    ci, co = w2.shape[0], w2.shape[1]
    offk = {0: ((0, 1), (-1, 3)), 1: ((0, 2), (1, 0))}   # parity bit -> ((offset, k), (offset, k))
    wpar = np.zeros((8, co, 8 * ci), np.float32)
    tap_offsets = []
    for e in range(8):
        ez, ey, ex = (e >> 2) & 1, (e >> 1) & 1, e & 1
        taps = []
        for iz in range(2):
            oz, kz = offk[ez][iz]
            for iy in range(2):
                oy, ky = offk[ey][iy]
                for ix in range(2):
                    ox, kx = offk[ex][ix]
                    t = (iz * 2 + iy) * 2 + ix
                    wpar[e, :, t * ci:(t + 1) * ci] = w2[:, :, kz, ky, kx].T
                    taps.append((oz, oy, ox))
        tap_offsets.append(tuple(taps))
    return wpar, tuple(tap_offsets)


# -------------------------------- full forward --------------------------------

def residual_layer_transpose_forward(x_ncdhw, params, activate_last=True):
    """Forward pass of ResidualLayerTranspose (stride=2, dropout=0, BN in batch-stats mode)."""
    W1, g1, b1 = params["W1"], params["g1"], params["b1"]
    W2, g2, b2 = params["W2"], params["g2"], params["b2"]
    W3, g3, b3 = params["W3"], params["g3"], params["b3"]
    Wp = params["Wp"]

    N, Cin, D, H, W = x_ncdhw.shape
    Cb = W1.shape[0]
    Cout = W3.shape[0]
    S1 = D * H * W
    ts1 = _spatial_tile(S1)

    # NCDHW already has channels ahead of spatial -> lane-dense (N, C, D*H*W) is FREE.
    x3 = x_ncdhw.reshape(N, Cin, S1).astype(jnp.float32)

    w1 = jnp.asarray(W1, jnp.float32).astype(MATMUL_DTYPE)
    w3 = jnp.asarray(W3, jnp.float32).astype(MATMUL_DTYPE)

    # ---- stage 1: conv1 (+ residual projection sharing the x read) + BN1 partial stats
    if Wp is not None:
        wp = jnp.asarray(Wp, jnp.float32).astype(MATMUL_DTYPE)
        y1, r, ps1, pss1 = _conv1_proj(x3, w1, wp, ts1)
    else:
        y1, ps1, pss1 = _conv1_only(x3, w1, ts1)
        r = x3
    sc1, sh1 = _bn_scale_shift(ps1, pss1, float(N * S1), g1, b1)

    # ---- stage 2: BN1+ReLU prologue + ConvTranspose3d (parity/tap matmuls) + BN2 partial stats
    wpar_np, tap_offsets = _convt_parity_weights(W2)
    wpar = jnp.asarray(wpar_np).astype(MATMUL_DTYPE)
    y2, ps2, pss2 = _bn_convt(y1, sc1, sh1, wpar, tap_offsets, (D, H, W))
    sc2, sh2 = _bn_scale_shift(ps2, pss2, float(N * 8 * S1), g2, b2)

    # ---- stage 3: BN2+ReLU prologue + conv3 + BN3 partial stats (parity-major is order-free for 1x1)
    y2v = y2.reshape(N * 8, Cb, S1)
    y3, ps3, pss3 = _bn_conv3(y2v, sc2, sh2, w3, ts1)
    sc3, sh3 = _bn_scale_shift(ps3, pss3, float(N * 8 * S1), g3, b3)

    # ---- stage 4: BN3 (+ReLU) + residual add (nearest x2 upsample == in-kernel parity broadcast)
    y3v = y3.reshape(N, 8, Cout, S1)
    out_pm = _bn3_residual(y3v, r, sc3, sh3, ts1, relu=activate_last)

    # pixel shuffle of the 8 parities folded into the (anyway required) NCDHW layout transform
    out = out_pm.reshape(N, 2, 2, 2, Cout, D, H, W)
    out = jnp.transpose(out, (0, 4, 5, 1, 6, 2, 7, 3))
    return out.reshape(N, Cout, 2 * D, 2 * H, 2 * W)


# ----------------------- pure-JAX reference (for checking) ---------------------

def reference_forward(x, params, activate_last=True, eps=EPS):
    W1, g1, b1 = params["W1"], params["g1"], params["b1"]
    W2, g2, b2 = params["W2"], params["g2"], params["b2"]
    W3, g3, b3 = params["W3"], params["g3"], params["b3"]
    Wp = params["Wp"]

    def conv1x1(t, w):  # w: (O, I)
        return jnp.einsum('ncdhw,oc->nodhw', t, w)

    def bn(t, g, b):
        mu = t.mean(axis=(0, 2, 3, 4), keepdims=True)
        var = t.var(axis=(0, 2, 3, 4), keepdims=True)
        g = g.reshape(1, -1, 1, 1, 1)
        b = b.reshape(1, -1, 1, 1, 1)
        return (t - mu) / jnp.sqrt(var + eps) * g + b

    relu = lambda t: jnp.maximum(t, 0.0)

    out = relu(bn(conv1x1(x, W1), g1, b1))
    wt = jnp.transpose(W2, (1, 0, 2, 3, 4))[:, :, ::-1, ::-1, ::-1]
    out = lax.conv_general_dilated(
        out, wt, window_strides=(1, 1, 1), padding=[(2, 2)] * 3,
        lhs_dilation=(2, 2, 2), dimension_numbers=('NCDHW', 'OIDHW', 'NCDHW'))
    out = relu(bn(out, g2, b2))
    out = bn(conv1x1(out, W3), g3, b3)
    if activate_last:
        out = relu(out)
    res = conv1x1(x, Wp) if Wp is not None else x
    res = jnp.repeat(jnp.repeat(jnp.repeat(res, 2, axis=2), 2, axis=3), 2, axis=4)
    return out + res


# ----------------------------------- main --------------------------------------

if __name__ == "__main__":
    key = jax.random.PRNGKey(0)
    N, Cin, Cout, D, H, W = 2, 8, 16, 4, 4, 4
    Cb = int(np.ceil(Cin / 4))
    ks = jax.random.split(key, 8)

    x = jax.random.normal(ks[0], (N, Cin, D, H, W), jnp.float32)
    params = dict(
        W1=0.3 * jax.random.normal(ks[1], (Cb, Cin), jnp.float32),          # conv1 (Cb,Cin,1,1,1)
        g1=jnp.ones((Cb,), jnp.float32), b1=jnp.zeros((Cb,), jnp.float32),
        W2=0.3 * jax.random.normal(ks[2], (Cb, Cb, 4, 4, 4), jnp.float32),  # ConvTranspose3d weight
        g2=1.0 + 0.1 * jax.random.normal(ks[3], (Cb,), jnp.float32),
        b2=0.1 * jax.random.normal(ks[4], (Cb,), jnp.float32),
        W3=0.3 * jax.random.normal(ks[5], (Cout, Cb), jnp.float32),         # conv3 (Cout,Cb,1,1,1)
        g3=jnp.ones((Cout,), jnp.float32), b3=jnp.zeros((Cout,), jnp.float32),
        Wp=0.3 * jax.random.normal(ks[6], (Cout, Cin), jnp.float32),        # projection (Cout,Cin,1,1,1)
    )

    out = jax.block_until_ready(residual_layer_transpose_forward(x, params))
    assert out.shape == (N, Cout, 2 * D, 2 * H, 2 * W), out.shape

    ref = jax.block_until_ready(reference_forward(x, params))
    # bf16 MXU operands (f32 accumulation / BN math) -> slightly looser tolerance than pure f32.
    np.testing.assert_allclose(np.asarray(out), np.asarray(ref), rtol=5e-2, atol=5e-2)

    print("KERNEL_OK")
</pallas_src>

<mosaic_0001>
module attributes {stable_mosaic.version = 11 : i64} {
  func.func @_conv1_proj_kernel(%arg0: i32, %arg1: i32, %arg2: memref<1x8x64xf32, #tpu.memory_space<vmem>>, %arg3: memref<2x8xbf16, #tpu.memory_space<vmem>>, %arg4: memref<16x8xbf16, #tpu.memory_space<vmem>>, %arg5: memref<1x2x64xf32, #tpu.memory_space<vmem>>, %arg6: memref<1x16x64xf32, #tpu.memory_space<vmem>>, %arg7: memref<1x1x2x1xf32, #tpu.memory_space<vmem>>, %arg8: memref<1x1x2x1xf32, #tpu.memory_space<vmem>>) attributes {dimension_semantics = [#tpu.dimension_semantics<parallel>, #tpu.dimension_semantics<parallel>], iteration_bounds = array<i64: 2, 1>, scalar_prefetch = 0 : i64, scratch_operands = 0 : i64, tpu.core_type = #tpu.core_type<tc>, window_params = [{transform_indices = @transform_0, window_bounds = array<i64: 1, 8, 64>}, {pipeline_mode = #tpu.pipeline_mode<synchronous>, transform_indices = @transform_1, window_bounds = array<i64: 2, 8>}, {pipeline_mode = #tpu.pipeline_mode<synchronous>, transform_indices = @transform_2, window_bounds = array<i64: 16, 8>}, {transform_indices = @transform_3, window_bounds = array<i64: 1, 2, 64>}, {transform_indices = @transform_4, window_bounds = array<i64: 1, 16, 64>}, {transform_indices = @transform_5, window_bounds = array<i64: 1, 1, 2, 1>}, {transform_indices = @transform_6, window_bounds = array<i64: 1, 1, 2, 1>}]} {
    %c0 = arith.constant 0 : index
    %c0_0 = arith.constant 0 : index
    %c0_1 = arith.constant 0 : index
    %0 = vector.load %arg2[%c0, %c0_0, %c0_1] : memref<1x8x64xf32, #tpu.memory_space<vmem>>, vector<1x8x64xf32>
    %1 = vector.shape_cast %0 : vector<1x8x64xf32> to vector<8x64xf32>
    %2 = arith.truncf %1 : vector<8x64xf32> to vector<8x64xbf16>
    %c0_2 = arith.constant 0 : index
    %c0_3 = arith.constant 0 : index
    %3 = vector.load %arg3[%c0_2, %c0_3] : memref<2x8xbf16, #tpu.memory_space<vmem>>, vector<2x8xbf16>
    %cst = arith.constant dense<0.000000e+00> : vector<2x64xf32>
    %4 = tpu.matmul %3, %2, %cst {dimension_numbers = #tpu.dot_dimension_numbers<[1], [0], [0], [1], [0, 0, 1, 1], [], []>} : vector<2x8xbf16>, vector<8x64xbf16>, vector<2x64xf32> -> vector<2x64xf32>
    %c0_4 = arith.constant 0 : index
    %c0_5 = arith.constant 0 : index
    %c0_6 = arith.constant 0 : index
    %5 = vector.load %arg5[%c0_4, %c0_5, %c0_6] : memref<1x2x64xf32, #tpu.memory_space<vmem>>, vector<1x2x64xf32>
    %6 = vector.shape_cast %5 : vector<1x2x64xf32> to vector<2x64xf32>
    %7 = vector.shape_cast %4 : vector<2x64xf32> to vector<1x2x64xf32>
    tpu.vector_store %arg5[%c0_4, %c0_5, %c0_6], %7 {strides = array<i32>} : memref<1x2x64xf32, #tpu.memory_space<vmem>>, vector<1x2x64xf32>,
    %c0_7 = arith.constant 0 : index
    %c0_8 = arith.constant 0 : index
    %8 = vector.load %arg4[%c0_7, %c0_8] : memref<16x8xbf16, #tpu.memory_space<vmem>>, vector<16x8xbf16>
    %cst_9 = arith.constant dense<0.000000e+00> : vector<16x64xf32>
    %9 = tpu.matmul %8, %2, %cst_9 {dimension_numbers = #tpu.dot_dimension_numbers<[1], [0], [0], [1], [0, 0, 1, 1], [], []>} : vector<16x8xbf16>, vector<8x64xbf16>, vector<16x64xf32> -> vector<16x64xf32>
    %c0_10 = arith.constant 0 : index
    %c0_11 = arith.constant 0 : index
    %c0_12 = arith.constant 0 : index
    %10 = vector.load %arg6[%c0_10, %c0_11, %c0_12] : memref<1x16x64xf32, #tpu.memory_space<vmem>>, vector<1x16x64xf32>
    %11 = vector.shape_cast %10 : vector<1x16x64xf32> to vector<16x64xf32>
    %12 = vector.shape_cast %9 : vector<16x64xf32> to vector<1x16x64xf32>
    tpu.vector_store %arg6[%c0_10, %c0_11, %c0_12], %12 {strides = array<i32>} : memref<1x16x64xf32, #tpu.memory_space<vmem>>, vector<1x16x64xf32>,
    %cst_13 = arith.constant dense<0.000000e+00> : vector<2xf32>
    %13 = vector.multi_reduction <add>, %4, %cst_13 [1] : vector<2x64xf32> to vector<2xf32>
    %14 = vector.shape_cast %13 : vector<2xf32> to vector<2x1xf32>
    %c0_14 = arith.constant 0 : index
    %c0_15 = arith.constant 0 : index
    %c0_16 = arith.constant 0 : index
    %c0_17 = arith.constant 0 : index
    %15 = vector.load %arg7[%c0_14, %c0_15, %c0_16, %c0_17] : memref<1x1x2x1xf32, #tpu.memory_space<vmem>>, vector<1x1x2x1xf32>
    %16 = vector.shape_cast %15 : vector<1x1x2x1xf32> to vector<2x1xf32>
    %17 = vector.shape_cast %14 : vector<2x1xf32> to vector<1x1x2x1xf32>
    tpu.vector_store %arg7[%c0_14, %c0_15, %c0_16, %c0_17], %17 {strides = array<i32>} : memref<1x1x2x1xf32, #tpu.memory_space<vmem>>, vector<1x1x2x1xf32>,
    %18 = arith.mulf %4, %4 : vector<2x64xf32>
    %cst_18 = arith.constant dense<0.000000e+00> : vector<2xf32>
    %19 = vector.multi_reduction <add>, %18, %cst_18 [1] : vector<2x64xf32> to vector<2xf32>
    %20 = vector.shape_cast %19 : vector<2xf32> to vector<2x1xf32>
    %c0_19 = arith.constant 0 : index
    %c0_20 = arith.constant 0 : index
    %c0_21 = arith.constant 0 : index
    %c0_22 = arith.constant 0 : index
    %21 = vector.load %arg8[%c0_19, %c0_20, %c0_21, %c0_22] : memref<1x1x2x1xf32, #tpu.memory_space<vmem>>, vector<1x1x2x1xf32>
    %22 = vector.shape_cast %21 : vector<1x1x2x1xf32> to vector<2x1xf32>
    %23 = vector.shape_cast %20 : vector<2x1xf32> to vector<1x1x2x1xf32>
    tpu.vector_store %arg8[%c0_19, %c0_20, %c0_21, %c0_22], %23 {strides = array<i32>} : memref<1x1x2x1xf32, #tpu.memory_space<vmem>>, vector<1x1x2x1xf32>,
    return
  }
  func.func @transform_0(%arg0: i32, %arg1: i32) -> (i32, i32, i32) {
    %c0_i32 = arith.constant 0 : i32
    %c0_i32_0 = arith.constant 0 : i32
    return %arg0, %c0_i32, %arg1 : i32, i32, i32
  }
  func.func @transform_1(%arg0: i32, %arg1: i32) -> (i32, i32) {
    %c0_i32 = arith.constant 0 : i32
    %c0_i32_0 = arith.constant 0 : i32
    %c0_i32_1 = arith.constant 0 : i32
    return %c0_i32, %c0_i32_0 : i32, i32
  }
  func.func @transform_2(%arg0: i32, %arg1: i32) -> (i32, i32) {
    %c0_i32 = arith.constant 0 : i32
    %c0_i32_0 = arith.constant 0 : i32
    %c0_i32_1 = arith.constant 0 : i32
    return %c0_i32, %c0_i32_0 : i32, i32
  }
  func.func @transform_3(%arg0: i32, %arg1: i32) -> (i32, i32, i32) {
    %c0_i32 = arith.constant 0 : i32
    %c0_i32_0 = arith.constant 0 : i32
    return %arg0, %c0_i32, %arg1 : i32, i32, i32
  }
  func.func @transform_4(%arg0: i32, %arg1: i32) -> (i32, i32, i32) {
    %c0_i32 = arith.constant 0 : i32
    %c0_i32_0 = arith.constant 0 : i32
    return %arg0, %c0_i32, %arg1 : i32, i32, i32
  }
  func.func @transform_5(%arg0: i32, %arg1: i32) -> (i32, i32, i32, i32) {
    %c0_i32 = arith.constant 0 : i32
    %c0_i32_0 = arith.constant 0 : i32
    %c0_i32_1 = arith.constant 0 : i32
    return %arg0, %arg1, %c0_i32, %c0_i32_0 : i32, i32, i32, i32
  }
  func.func @transform_6(%arg0: i32, %arg1: i32) -> (i32, i32, i32, i32) {
    %c0_i32 = arith.constant 0 : i32
    %c0_i32_0 = arith.constant 0 : i32
    %c0_i32_1 = arith.constant 0 : i32
    return %arg0, %arg1, %c0_i32, %c0_i32_0 : i32, i32, i32, i32
  }
}

</mosaic_0001>

<bundles_post_ra>
// kernel: tpu_custom_call.1
= control target key start
LH: loop header
LB: loop body
LE: loop exit
PB: predicated region body
PF: predicated region fallthrough
CT: control target
= control target key end

     0   :  { %12 = vsyncpa [#allocation3], 0  ;;  %s1200_s0 = inlined_call_operand.hbm [shape: f32[2,8,64], index: 0, kind: input, shape index: {}]   ;;  %s1201_s1 = inlined_call_operand.vmem [shape: bf16[2,8], index: 1, kind: input, shape index: {}]   ;;  %s1202_s2 = inlined_call_operand.vmem [shape: bf16[16,8], index: 2, kind: input, shape index: {}]   ;;  %s1203_s3 = inlined_call_operand.hbm [shape: f32[2,2,64], index: 3, kind: output, shape index: {0}]   ;;  %s1204_s4 = inlined_call_operand.hbm [shape: f32[2,16,64], index: 4, kind: output, shape index: {1}]   ;;  %s1205_s5 = inlined_call_operand.vmem [shape: f32[2,1,2,1], index: 5, kind: output, shape index: {2}]   ;;  %s1206_s6 = inlined_call_operand.vmem [shape: f32[2,1,2,1], index: 6, kind: output, shape index: {3}]  }
   0x1   :  { %14 = vsyncpa [#allocation3 + $0x1], 0 }
   0x2   :  { %15 = vsyncpa [#allocation4], 0 }
   0x3   :  { %17 = vsyncpa [#allocation4 + $0x1], 0 }
   0x4   :  { %18 = vsyncpa [#allocation7], 0 }
   0x5   :  { %20 = vsyncpa [#allocation7 + $0x1], 0  ;;  %s983_s21 = smov 0   ;;  %s985_s22 = smov 0  }
   0x6   :  { %s987_s23 = smov 0   ;;  %s989_s24 = smov 0  }
   0x7   :  { %s991_s25 = smov 0   ;;  %s993_s26 = smov 0  }
   0x8 LB: > { %s684_s27 = sadd.s32 4294967295, %s939_s26   ;;  %s685_s28 = sadd.s32 4294967294, %s939_s26   ;;  %s939_s26 = sphi %s993_s26, %s26_s26   ;;  %s935_s25 = sphi %s991_s25, %s1222_s25   ;;  %s931_s24 = sphi %s989_s24, %s1221_s24   ;;  %s927_s23 = sphi %s987_s23, %s1220_s23   ;;  %s923_s22 = sphi %s985_s22, %s1219_s22   ;;  %s919_s21 = sphi %s983_s21, %s1218_s21  }
   0x9   : > { %s38_s29 = sadd.s32 1, %s935_s25  ;;  %s47_s30 = sadd.s32 1, %s927_s23 }
   0xa   : > { %p40_p0 = scmp.ge.s32.totalorder %s38_s29, 2  ;;  %p54_p1 = scmp.ne.s32.totalorder %s927_s23, %s923_s22 }
   0xb   : > { %p55_p2 = scmp.eq.s32.totalorder %s939_s26, 0  ;;  %p60_p3 = scmp.ne.s32.totalorder %s923_s22, %s919_s21 }
   0xc   : > { %s1224_s29 = smov (%p40_p0, %s38_s29), 0  ;;  %p61_p5 = scmp.eq.s32.totalorder %s684_s27, 0 }
   0xd   : > { %p1024_p4 = por %p55_p2, %p54_p1  ;;  %s42_s8 = ssub.s32 %s935_s25, %s1224_s29 }
   0xe   : > { %p128_p6 = scmp.eq.s32.totalorder %s684_s27, 1  ;;  %p45_p7 = scmp.eq.s32.totalorder %s42_s8, 0 }
   0xf   : > { %p1030_p8 = por %p61_p5, %p60_p3  ;;  %p134_p10 = scmp.eq.s32.totalorder %s685_s28, 1 }
  0x10   : > { %p1034_p9 = por %p128_p6, %p54_p1  ;;  %p740_p13 = scmp.lt.s32.totalorder %s939_s26, 2 }
  0x11   : > { %s1039_s11 = scalar_select %p45_p7, %s927_s23, %s47_s30  }
  0x12   : > { %s1210_s10 = scalar_select %p1034_p9, 1, 0 }
  0x13   : > { %p1041_p11 = por %p134_p10, %p60_p3  ;;  %s244_s13 = sand.u32 1, %s927_s23  }
  0x14   : > { %s688_s14 = sshll.u32 %s244_s13, 3  ;;  %s689_s15 = sshll.u32 %s935_s25, 7 }
  0x15   : > { %s1211_s12 = scalar_select %p1041_p11, 1, 0 }
  0x16   : > { %s1052_s18 = scalar_lea.hbm %s1200_s0, %s689_s15  ;;  %s248_s19 = scalar_lea.vmem [#allocation2], %s688_s14 }
  0x17   : > { %s256_s20 = sshll.u32 %s248_s19, 4  ;;  %p1058_p0 = pnand %p740_p13, %p1024_p4  ;;  %s1054_s20 = int_to_ptr.vmem [resolvable:$true] %s256_s20 }
  0x18   : > { %s245_s28 = scalar_lea.sflag [#allocation3], %s244_s13  ;;  %s795_s30 = scalar_lea.hbm %s1052_s18, 128 }
  0x19   : > { %p796_p3 = scmp.ne.s32.totalorder %s1052_s18, %s795_s30  ;;  %p797_p5 = pneg %p1058_p0 }
  0x1a   : > { %s800_s7 = scalar_lea.hbm %s1200_s0, 256  ;;  %p801_p4 = scmp.lt.u32.totalorder %s1052_s18, %s1200_s0 }
  0x1b   : > { %p798_p6 = pnand %p797_p5, %p796_p3  ;;  %p802_p10 = scmp.lt.u32.totalorder %s800_s7, %s795_s30 }
  0x1c   : > { %p804_p12 = scmp.lt.u32.totalorder %s795_s30, %s1052_s18 }
  0x1d   : > { %p799_p7 = pneg %p798_p6  ;;  %p803_p13 = por %p802_p10, %p801_p4 }
  0x1f   : > { %p805_p1 = por %p804_p12, %p803_p13 }
  0x21   : > { %p806_p2 = pnand %p805_p1, %p799_p7 }
  0x23   : > { %809 = shalt.err (!%p806_p2)
}
  0x24   : > { %s810_s13 = scalar_lea.vmem %s1054_s20, 128  ;;  %s941_s17 = smov [#allocation2]  }
  0x25   : > { %p811_p3 = scmp.ne.s32.totalorder %s1054_s20, %s810_s13  ;;  %s815_s19 = sshll.u32 %s941_s17, 4  ;;  %s816_s19 = int_to_ptr.vmem [resolvable:$false] %s815_s19 }
  0x26   : > { %s817_s8 = scalar_lea.vmem %s816_s19, 256  ;;  %p818_p9 = scmp.lt.s32.totalorder %s1054_s20, %s816_s19 }
  0x27   : > { %p813_p6 = pnand %p811_p3, %p797_p5  ;;  %p819_p4 = scmp.lt.s32.totalorder %s817_s8, %s810_s13 }
  0x29   : > { %p814_p11 = pneg %p813_p6  ;;  %p820_p10 = por %p819_p4, %p818_p9 }
  0x2b   : > { %p821_p12 = pnand %p820_p10, %p814_p11 }
  0x2d   : > { %824 = shalt.err (!%p821_p12)
}
  0x2e   : > { %732 = dma.hbm_to_vmem [thread:$0]  (!%p1058_p0), %s1052_s18, 128, %s1054_s20, %s245_s28  }
  0x2f   : > { %p1213_p1 = scmp.lt.s32.totalorder %s939_s26, 3  ;;  %p1214_p2 = scmp.ge.s32.totalorder %s939_s26, 1 }
  0x31   : > { %p262_p5 = pnand %p1214_p2, %p1213_p1 }
  0x32   : > { %s1094_s30 = sand.u32 (!%p262_p5), 1, %s923_s22  }
  0x33   : > { %265 = sbr.rel (%p262_p5) target bundleno = 426 (0x1aa), region = 32  ;;  %s691_s14 = sshll.u32 (!%p262_p5), %s1094_s30, 3 }
  0x34   : > { %s268_s7 = scalar_lea.sflag (!%p262_p5), [#allocation3], %s1094_s30  ;;  %s271_s15 = scalar_lea.vmem (!%p262_p5), [#allocation2], %s691_s14 }
  0x3a   : > { %906 = dma.done.wait (%p1030_p8), %s268_s7, 128  }
  0x3b   : > { %908 = vsyncadd (%p1030_p8), %s268_s7, 4294967168  ;;  %v942_v0 = vmov 0.0   ;;  %vm943_vm0 = vmmov 0   ;;  %v334_v1 = vld [vmem:[%s271_s15] sm:$0xff]  ;;  %vm341_vm1 = vcmask 1043456   ;;  %vm337_vm2 = vcmask 64512  }
  0x3c   : > { %711 = vmatprep.subr.bf16.mxu0 %v942_v0  ;;  %713 = vmatprep.mubr.msk.bf16.mxu0 %vm943_vm0, %v942_v0  ;;  %v335_v2 = vpack.c.bf16 %v334_v1, %v334_v1  ;;  %v794_v4 = vld [vmem:[%s1202_s2] sm:$0xff]   ;;  %s693_s28 = sshll.u32 %s1094_s30, 4  ;;  %s692_s16 = sshll.u32 %s1094_s30, 1  ;;  %vm385_vm3 = vcmask 517120   ;;  %vm438_vm4 = vcmask 523264  }
  0x3d   : > { %717 = vmatprep.subr.bf16.mxu1 %v942_v0  ;;  %719 = vmatprep.mubr.msk.bf16.mxu1 %vm943_vm0, %v942_v0  ;;  %v336_v5 = vld [vmem:[%s1201_s1] sm:$0x1]  ;;  %s300_s13 = scalar_lea.vmem [#allocation6], %s693_s28  ;;  %s293_s17 = scalar_lea.vmem [#allocation5], %s692_s16 }
  0x3e   : > { %v343_v3 = vsel %vm341_vm1, %v335_v2, 0  ;;  %s499_s19 = sshll.u32 %s300_s13, 4  ;;  %s701_s8 = sshll.u32 %s931_s24, 5  ;;  %s1113_s19 = int_to_ptr.vmem [resolvable:$true] %s499_s19 }
  0x3f   : > { %712 = vmatpush3.bf16.msra.mxu0 %v343_v3  ;;  %718 = vmatpush3.bf16.msra.mxu1 %v343_v3  ;;  %s485_s14 = sshll.u32 %s293_s17, 4  ;;  %s1119_s18 = scalar_lea.hbm %s1203_s3, %s701_s8  ;;  %s486_s14 = int_to_ptr.vmem [resolvable:$true] %s485_s14 }
  0x40   : > { %s452_s20 = scalar_lea.sflag [#allocation4], %s1094_s30  ;;  %s825_s27 = scalar_lea.vmem %s486_s14, 32 }
  0x41   : > { %p826_p8 = scmp.ne.s32.totalorder %s486_s14, %s825_s27  ;;  %p1215_p9 = scmp.ne.s32.totalorder %s1210_s10, 0 }
  0x42   : > { %714 = vmatmul.mubr.msk.bf16.vlgmr.msra.gmra.mrb[0].mxu0 %vm337_vm2, %v336_v5  ;;  %720 = vmatmul.mubr.msk.bf16.vlgmr.msra.gmra.mrb[0].mxu1 %vm337_vm2, %v794_v4  ;;  %s944_s9 = smov [#allocation5]  }
  0x43   : > { %p827_p11 = pnand %p826_p8, %p1215_p9  ;;  %s829_s28 = sshll.u32 %s944_s9, 4  ;;  %s830_s28 = int_to_ptr.vmem [resolvable:$false] %s829_s28 }
  0x44   : > { %s831_s16 = scalar_lea.vmem %s830_s28, 64  ;;  %p832_p7 = scmp.lt.s32.totalorder %s486_s14, %s830_s28 }
  0x45   : > { %p828_p0 = pneg %p827_p11  ;;  %p833_p13 = scmp.lt.s32.totalorder %s831_s16, %s825_s27 }
  0x47   : > { %p834_p3 = por %p833_p13, %p832_p7 }
  0x49   : > { %p835_p6 = pnand %p834_p3, %p828_p0 }
 0x115   : > { %v379_v6 = vpop.f32.mrb[0].mxu0  ;;  %v431_v7 = vpop.f32.mrb[0].mxu1 }
 0x116   : > { %v715_v8 = vpop.f32.mrb[1].mxu0  ;;  %v441_v9 = vsel %vm385_vm3, %v379_v6, 0.0  ;;  %v446_v10 = vmul.f32 %v379_v6, %v379_v6  ;;  %439 = vst.msk [vmem:[%s300_s13] sm:$0xff] %vm438_vm4, %v431_v7  ;;  %v721_v11 = vpop.f32.mrb[1].mxu1 }
 0x117   : > { %386 = vst.msk [vmem:[%s293_s17] sm:$0x3] %vm385_vm3, %v379_v6  ;;  %442 = vadd.xlane.f32.xlu0 %v441_v9  ;;  %v382_v12 = vpop.f32.mrb[2].mxu0  ;;  %v434_v13 = vpop.f32.mrb[2].mxu1 }
 0x118   : > { %v716_v14 = vpop.f32.mrb[3].mxu0  ;;  %440 = vst.msk [vmem:[%s300_s13 + $0x8] sm:$0xff] %vm438_vm4, %v434_v13  ;;  %v722_v15 = vpop.f32.mrb[3].mxu1  ;;  %v447_v16 = vsel %vm385_vm3, %v446_v10, 0.0 }
 0x11b   : > { %448 = vadd.xlane.f32.xlu0 %v447_v16 }
 0x11c   : > { %838 = shalt.err (!%p835_p6)
}
 0x11d   : > { %s839_s13 = scalar_lea.hbm %s1119_s18, 32  ;;  %s843_s7 = scalar_lea.hbm %s1203_s3, 64 }
 0x11e   : > { %p840_p4 = scmp.ne.s32.totalorder %s1119_s18, %s839_s13  ;;  %p844_p1 = scmp.lt.u32.totalorder %s1119_s18, %s1203_s3 }
 0x11f   : > { %p845_p2 = scmp.lt.u32.totalorder %s843_s7, %s839_s13  ;;  %p847_p8 = scmp.lt.u32.totalorder %s839_s13, %s1119_s18 }
 0x120   : > { %p841_p10 = pnand %p840_p4, %p1215_p9 }
 0x121   : > { %p846_p5 = por %p845_p2, %p844_p1 }
 0x122   : > { %p842_p12 = pneg %p841_p10 }
 0x123   : > { %p848_p11 = por %p847_p8, %p846_p5 }
 0x125   : > { %p849_p0 = pnand %p848_p11, %p842_p12 }
 0x127   : > { %852 = shalt.err (!%p849_p0)
}
 0x128   : > { %725 = dma.vmem_to_hbm [thread:$0]  (%p1215_p9), %s486_s14, 32, %s1119_s18, %s452_s20  }
 0x129   : > { %s706_s27 = sshll.u32 %s931_s24, 8  ;;  %s457_s13 = scalar_lea.sflag [#allocation7], %s1094_s30 }
 0x12a   : > { %s1143_s17 = scalar_lea.hbm %s1204_s4, %s706_s27  ;;  %s853_s8 = scalar_lea.vmem %s1113_s19, 256 }
 0x12b   : > { %p854_p7 = scmp.ne.s32.totalorder %s1113_s19, %s853_s8  ;;  %s945_s7 = smov [#allocation6]  }
 0x12c   : > { %s857_s15 = sshll.u32 %s945_s7, 4  ;;  %s858_s15 = int_to_ptr.vmem [resolvable:$false] %s857_s15 }
 0x12d   : > { %p855_p13 = pnand %p854_p7, %p1215_p9  ;;  %s859_s9 = scalar_lea.vmem %s858_s15, 512 }
 0x12e   : > { %p860_p6 = scmp.lt.s32.totalorder %s1113_s19, %s858_s15  ;;  %p861_p4 = scmp.lt.s32.totalorder %s859_s9, %s853_s8 }
 0x12f   : > { %p856_p3 = pneg %p855_p13 }
 0x130   : > { %p862_p10 = por %p861_p4, %p860_p6 }
 0x132   : > { %p863_p12 = pnand %p862_p10, %p856_p3 }
 0x134   : > { %866 = shalt.err (!%p863_p12)
}
 0x135   : > { %s867_s14 = scalar_lea.hbm %s1143_s17, 256  ;;  %s871_s27 = scalar_lea.hbm %s1204_s4, 512 }
 0x136   : > { %p868_p1 = scmp.ne.s32.totalorder %s1143_s17, %s867_s14  ;;  %p872_p8 = scmp.lt.u32.totalorder %s1143_s17, %s1204_s4 }
 0x137   : > { %p873_p11 = scmp.lt.u32.totalorder %s871_s27, %s867_s14  ;;  %p875_p7 = scmp.lt.u32.totalorder %s867_s14, %s1143_s17 }
 0x138   : > { %p869_p2 = pnand %p868_p1, %p1215_p9 }
 0x139   : > { %p874_p0 = por %p873_p11, %p872_p8 }
 0x13a   : > { %p870_p5 = pneg %p869_p2 }
 0x13b   : > { %p876_p13 = por %p875_p7, %p874_p0 }
 0x13d   : > { %p877_p3 = pnand %p876_p13, %p870_p5 }
 0x13f   : > { %880 = shalt.err (!%p877_p3)
}
 0x140   : > { %s946_s8 = smov 128   ;;  %s947_s7 = smov 8   ;;  %vm444_vm5 = vcmask 1024  }
 0x141   : > { %726 = dma.vmem_to_hbm [thread:$0]  (%p1215_p9), %s1113_s19, 256, %s1143_s17, %s457_s13, %s946_s8, %s946_s8, %s947_s7  }
 0x142   : > { %p319_p6 = scmp.lt.s32.totalorder %s931_s24, 1 }
 0x144   : > { %s1226_s24 = smov (!%p319_p6, %s931_s24), 1 }
 0x145   : > { %s694_s15 = sshll.u32 %s1226_s24, 1 }
 0x146   : > { %s325_s14 = scalar_lea.vmem %s1205_s5, %s694_s15  ;;  %s332_s28 = scalar_lea.vmem %s1206_s6, %s694_s15 }
 0x1a4   : > { %v443_v17 = vpop.xlane.xlu0 %442 }
 0x1a5   : > { %445 = vst.msk [vmem:[%s325_s14] sm:$0x3] %vm444_vm5, %v443_v17 }
 0x1a8   : > { %v449_v18 = vpop.xlane.xlu0 %448 }
 0x1a9   : > { %450 = vst.msk [vmem:[%s332_s28] sm:$0x3] %vm444_vm5, %v449_v18 }
 0x1aa PF: > { %s520_s10 = sand.u32 1, %s919_s21   ;;  %p1216_p9 = scmp.ne.s32.totalorder %s1211_s12, 0 }
 0x1ab   : > { %p1217_p4 = scmp.ge.s32.totalorder %s939_s26, 2  ;;  %s521_s24 = scalar_lea.sflag [#allocation4], %s520_s10 }
 0x1ad   : > { %p734_p10 = pnand %p1217_p4, %p1216_p9 }
 0x1af   : > { %910 = dma.done.wait (!%p734_p10), %s521_s24, 32  }
 0x1b0   : > { %912 = vsyncadd (!%p734_p10), %s521_s24, 4294967264  ;;  %s530_s30 = scalar_lea.sflag [#allocation7], %s520_s10 }
 0x1b1   : > { %914 = dma.done.wait (!%p734_p10), %s530_s30, 256  }
 0x1b2   : > { %916 = vsyncadd (!%p734_p10), %s530_s30, 4294967040  ;;  %s26_s26 = sadd.s32 1, %s939_s26   ;;  %s1218_s21 = smov %s923_s22 }
 0x1b3   : > { %p23_p12 = scmp.ge.s32.totalorder %s26_s26, 4   ;;  %s1219_s22 = smov %s927_s23 }
 0x1b4   : > { %s1220_s23 = smov %s1039_s11  ;;  %s1221_s24 = smov %s935_s25 }
 0x1b5   : > { %s1222_s25 = smov %s1224_s29  ;;  %25 = sbr.rel (!%p23_p12) target bundleno = 8 (0x8), region = 118 }
 0x1bc   :  { %555 = vsyncpa [#allocation3], 1 }
 0x1bd   :  { %557 = vsyncpa [#allocation3 + $0x1], 1 }
 0x1be   :  { %558 = vsyncpa [#allocation4], 1 }
 0x1bf   :  { %560 = vsyncpa [#allocation4 + $0x1], 1 }
 0x1c0   :  { %561 = vsyncpa [#allocation7], 1 }
 0x1c1   :  { %563 = vsyncpa [#allocation7 + $0x1], 1 }

</bundles_post_ra>
